<compile_context>
chip_gen: v7x
topology: tpu7x:2x2x1
jax: 0.10.0
libtpu: 0.0.40
codegen_flags: <defaults>
</compile_context>

<pallas_src>
import functools

import jax
import jax.numpy as jnp
from jax.experimental import pallas as pl
from jax.experimental.pallas import tpu as pltpu


def _round_up(x, m):
    return ((x + m - 1) // m) * m


def _tpu_defaults():
    """(max_batch_tile, vmem_limit_bytes) tuned per TPU generation."""
    try:
        kind = jax.devices()[0].device_kind.lower()
    except Exception:
        kind = ""
    if "v7" in kind:
        # 64 MiB physical VMEM, 2 TensorCores: smaller tile, stay well under the cap.
        return 256, 48 * 1024 * 1024
    if "v6" in kind:
        # 128 MiB physical VMEM: big tiles, raise the scoped limit.
        return 1024, 96 * 1024 * 1024
    if "v5" in kind:
        # 128 MiB physical VMEM, but 16 MiB scoped default -> raise it.
        return 512, 64 * 1024 * 1024
    return 256, 64 * 1024 * 1024


def _pick_batch_tile(batch, max_batch_tile):
    # Aim for >= 2 grid steps when the batch allows it (so the "parallel" batch
    # axis can be sharded across v7x's 2 TensorCores); keep TB a multiple of
    # 16 sublanes, and never larger than the (8-rounded) batch itself.
    tb = min(max_batch_tile, _round_up(-(-batch // 2), 16))
    tb = min(tb, _round_up(batch, 8))
    return max(tb, 8)


def prepare_classifier_params(w1, b1, w2, b2):
    """One-time (init-time) weight padding + bf16 cast.

    w1: (D, H) f32   b1: (H,) f32    (nn.Linear weight stored (in, out) == W.T)
    w2: (H, C) f32   b2: (C,) f32
    Zero padding is mathematically exact: padded hidden units are ReLU(0)=0 and
    padded w2 rows/cols are 0, so they contribute nothing to real outputs.
    """
    D, H = w1.shape
    C = w2.shape[1]
    Hp = _round_up(H, 128)
    Cp = _round_up(C, 128)
    w1_p = jnp.zeros((D, Hp), jnp.bfloat16).at[:, :H].set(w1.astype(jnp.bfloat16))
    b1_p = jnp.zeros((1, Hp), jnp.float32).at[:, :H].set(b1.reshape(1, H).astype(jnp.float32))
    w2_p = jnp.zeros((Hp, Cp), jnp.bfloat16).at[:H, :C].set(w2.astype(jnp.bfloat16))
    b2_p = jnp.zeros((1, Cp), jnp.float32).at[:, :C].set(b2.reshape(1, C).astype(jnp.float32))
    return w1_p, b1_p, w2_p, b2_p


def _classifier_kernel(x_ref, w1_ref, b1_ref, w2_ref, b2_ref, o_ref):
    # x arrives as f32 straight from HBM (no wrapper pad/cast pass); cast to
    # bf16 on the VPU just before the MXU matmul (f32 accumulate).
    x = x_ref[...].astype(jnp.bfloat16)
    h = jnp.dot(x, w1_ref[...], preferred_element_type=jnp.float32)
    # Bias + ReLU in f32 on the VPU (v5e has no bf16 VPU path).
    h = jnp.maximum(h + b1_ref[...], 0.0)
    # Dropout(p=0.5): inference/eval mode == identity.
    # TODO(synk): training-mode dropout would mask via pltpu.prng_seed /
    #             pltpu.prng_random_bits and scale by 1/(1-p); eval identity here.
    out = jnp.dot(h.astype(jnp.bfloat16), w2_ref[...],
                  preferred_element_type=jnp.float32)
    o_ref[...] = (out + b2_ref[...]).astype(o_ref.dtype)


@functools.partial(
    jax.jit,
    static_argnames=("num_classes", "max_batch_tile", "vmem_limit_bytes"))
def classifier_forward(x, w1_p, b1_p, w2_p, b2_p, *, num_classes,
                       max_batch_tile=None, vmem_limit_bytes=None):
    """Fused Linear -> ReLU -> Dropout(eval) -> Linear forward on TPU.

    x: (B, D) f32; padded params come from prepare_classifier_params().
    Returns (B, num_classes) f32.
    """
    B, D = x.shape
    Hp = w1_p.shape[1]
    Cp = w2_p.shape[1]

    if max_batch_tile is None or vmem_limit_bytes is None:
        d_tile, d_vmem = _tpu_defaults()
        max_batch_tile = max_batch_tile or d_tile
        vmem_limit_bytes = vmem_limit_bytes or d_vmem

    TB = _pick_batch_tile(B, max_batch_tile)
    grid = (pl.cdiv(B, TB),)

    # Constant index_map -> weights/biases stay resident; one buffer is enough.
    resident = dict(pipeline_mode=pl.Buffered(1))

    out_p = pl.pallas_call(
        _classifier_kernel,
        out_shape=jax.ShapeDtypeStruct((B, Cp), jnp.float32),
        grid_spec=pltpu.PrefetchScalarGridSpec(
            num_scalar_prefetch=0,
            grid=grid,
            in_specs=[
                pl.BlockSpec((TB, D), lambda i: (i, 0)),               # x: tiled over batch
                pl.BlockSpec((D, Hp), lambda i: (0, 0), **resident),   # w1: resident
                pl.BlockSpec((1, Hp), lambda i: (0, 0), **resident),   # b1: resident
                pl.BlockSpec((Hp, Cp), lambda i: (0, 0), **resident),  # w2: resident
                pl.BlockSpec((1, Cp), lambda i: (0, 0), **resident),   # b2: resident
            ],
            out_specs=pl.BlockSpec((TB, Cp), lambda i: (i, 0)),
        ),
        compiler_params=pltpu.CompilerParams(
            dimension_semantics=("parallel",),      # batch tiles -> megacore sharding
            vmem_limit_bytes=vmem_limit_bytes,
        ),
    )(x, w1_p, b1_p, w2_p, b2_p)

    return out_p[:, :num_classes]


def reference_forward(x, w1, b1, w2, b2):
    h = jnp.maximum(x @ w1 + b1[None, :], 0.0)
    return h @ w2 + b2[None, :]


if __name__ == "__main__":
    # Small shapes consistent with the module's forward:
    # batch=8, input_dim=32 -> hidden = input_dim // 2 = 16, num_classes=4
    batch = 8
    input_dim = 32
    hidden = input_dim // 2
    num_classes = 4

    key = jax.random.PRNGKey(0)
    kx, kw1, kb1, kw2, kb2 = jax.random.split(key, 5)

    x = jax.random.normal(kx, (batch, input_dim), dtype=jnp.float32)
    # Deterministic params (nn.Linear weights stored transposed as (in, out)).
    w1 = jax.random.normal(kw1, (input_dim, hidden), dtype=jnp.float32) * 0.1
    b1 = jax.random.normal(kb1, (hidden,), dtype=jnp.float32) * 0.1
    w2 = jax.random.normal(kw2, (hidden, num_classes), dtype=jnp.float32) * 0.1
    b2 = jax.random.normal(kb2, (num_classes,), dtype=jnp.float32) * 0.1

    # One-time (init-style) weight padding / casting — hoisted out of the forward.
    params = prepare_classifier_params(w1, b1, w2, b2)
    params = tuple(jax.block_until_ready(p) for p in params)

    out = classifier_forward(x, *params, num_classes=num_classes)
    out = jax.block_until_ready(out)

    ref = reference_forward(x, w1, b1, w2, b2)
    assert out.shape == (batch, num_classes)
    # bf16 matmul inputs (f32 accumulate) -> loosened tolerance vs f32 reference.
    assert jnp.allclose(out, ref, atol=2e-2, rtol=2e-2), "mismatch vs reference"

    print("KERNEL_OK")
</pallas_src>

<mosaic_0001>
module attributes {stable_mosaic.version = 11 : i64} {
  func.func @_classifier_kernel(%arg0: i32, %arg1: memref<8x32xf32, #tpu.memory_space<vmem>>, %arg2: memref<32x128xbf16, #tpu.memory_space<vmem>>, %arg3: memref<1x128xf32, #tpu.memory_space<vmem>>, %arg4: memref<128x128xbf16, #tpu.memory_space<vmem>>, %arg5: memref<1x128xf32, #tpu.memory_space<vmem>>, %arg6: memref<8x128xf32, #tpu.memory_space<vmem>>) attributes {dimension_semantics = [#tpu.dimension_semantics<parallel>], iteration_bounds = array<i64: 1>, scalar_prefetch = 0 : i64, scratch_operands = 0 : i64, tpu.core_type = #tpu.core_type<tc>, window_params = [{transform_indices = @transform_0, window_bounds = array<i64: 8, 32>}, {pipeline_mode = #tpu.pipeline_mode<synchronous>, transform_indices = @transform_1, window_bounds = array<i64: 32, 128>}, {pipeline_mode = #tpu.pipeline_mode<synchronous>, transform_indices = @transform_2, window_bounds = array<i64: 1, 128>}, {pipeline_mode = #tpu.pipeline_mode<synchronous>, transform_indices = @transform_3, window_bounds = array<i64: 128, 128>}, {pipeline_mode = #tpu.pipeline_mode<synchronous>, transform_indices = @transform_4, window_bounds = array<i64: 1, 128>}, {transform_indices = @transform_5, window_bounds = array<i64: 8, 128>}]} {
    %c0 = arith.constant 0 : index
    %c0_0 = arith.constant 0 : index
    %0 = vector.load %arg1[%c0, %c0_0] : memref<8x32xf32, #tpu.memory_space<vmem>>, vector<8x32xf32>
    %1 = arith.truncf %0 : vector<8x32xf32> to vector<8x32xbf16>
    %c0_1 = arith.constant 0 : index
    %c0_2 = arith.constant 0 : index
    %2 = vector.load %arg2[%c0_1, %c0_2] : memref<32x128xbf16, #tpu.memory_space<vmem>>, vector<32x128xbf16>
    %cst = arith.constant dense<0.000000e+00> : vector<8x128xf32>
    %3 = tpu.matmul %1, %2, %cst {dimension_numbers = #tpu.dot_dimension_numbers<[1], [0], [0], [1], [0, 0, 1, 1], [], []>} : vector<8x32xbf16>, vector<32x128xbf16>, vector<8x128xf32> -> vector<8x128xf32>
    %c0_3 = arith.constant 0 : index
    %c0_4 = arith.constant 0 : index
    %4 = vector.load %arg3[%c0_3, %c0_4] : memref<1x128xf32, #tpu.memory_space<vmem>>, vector<1x128xf32>
    %5 = vector.broadcast %4 : vector<1x128xf32> to vector<8x128xf32>
    %6 = arith.addf %3, %5 : vector<8x128xf32>
    %cst_5 = arith.constant 0.000000e+00 : f32
    %7 = vector.broadcast %cst_5 : f32 to vector<8x128xf32>
    %8 = arith.maximumf %6, %7 : vector<8x128xf32>
    %9 = arith.truncf %8 : vector<8x128xf32> to vector<8x128xbf16>
    %c0_6 = arith.constant 0 : index
    %c0_7 = arith.constant 0 : index
    %10 = vector.load %arg4[%c0_6, %c0_7] : memref<128x128xbf16, #tpu.memory_space<vmem>>, vector<128x128xbf16>
    %cst_8 = arith.constant dense<0.000000e+00> : vector<8x128xf32>
    %11 = tpu.matmul %9, %10, %cst_8 {dimension_numbers = #tpu.dot_dimension_numbers<[1], [0], [0], [1], [0, 0, 1, 1], [], []>} : vector<8x128xbf16>, vector<128x128xbf16>, vector<8x128xf32> -> vector<8x128xf32>
    %c0_9 = arith.constant 0 : index
    %c0_10 = arith.constant 0 : index
    %12 = vector.load %arg5[%c0_9, %c0_10] : memref<1x128xf32, #tpu.memory_space<vmem>>, vector<1x128xf32>
    %13 = vector.broadcast %12 : vector<1x128xf32> to vector<8x128xf32>
    %14 = arith.addf %11, %13 : vector<8x128xf32>
    %c0_11 = arith.constant 0 : index
    %c0_12 = arith.constant 0 : index
    %15 = vector.load %arg6[%c0_11, %c0_12] : memref<8x128xf32, #tpu.memory_space<vmem>>, vector<8x128xf32>
    tpu.vector_store %arg6[%c0_11, %c0_12], %14 {strides = array<i32>} : memref<8x128xf32, #tpu.memory_space<vmem>>, vector<8x128xf32>,
    return
  }
  func.func @transform_0(%arg0: i32) -> (i32, i32) {
    %c0_i32 = arith.constant 0 : i32
    %c0_i32_0 = arith.constant 0 : i32
    return %arg0, %c0_i32 : i32, i32
  }
  func.func @transform_1(%arg0: i32) -> (i32, i32) {
    %c0_i32 = arith.constant 0 : i32
    %c0_i32_0 = arith.constant 0 : i32
    %c0_i32_1 = arith.constant 0 : i32
    return %c0_i32, %c0_i32_0 : i32, i32
  }
  func.func @transform_2(%arg0: i32) -> (i32, i32) {
    %c0_i32 = arith.constant 0 : i32
    %c0_i32_0 = arith.constant 0 : i32
    %c0_i32_1 = arith.constant 0 : i32
    return %c0_i32, %c0_i32_0 : i32, i32
  }
  func.func @transform_3(%arg0: i32) -> (i32, i32) {
    %c0_i32 = arith.constant 0 : i32
    %c0_i32_0 = arith.constant 0 : i32
    %c0_i32_1 = arith.constant 0 : i32
    return %c0_i32, %c0_i32_0 : i32, i32
  }
  func.func @transform_4(%arg0: i32) -> (i32, i32) {
    %c0_i32 = arith.constant 0 : i32
    %c0_i32_0 = arith.constant 0 : i32
    %c0_i32_1 = arith.constant 0 : i32
    return %c0_i32, %c0_i32_0 : i32, i32
  }
  func.func @transform_5(%arg0: i32) -> (i32, i32) {
    %c0_i32 = arith.constant 0 : i32
    %c0_i32_0 = arith.constant 0 : i32
    return %arg0, %c0_i32 : i32, i32
  }
}

</mosaic_0001>

<bundles_post_ra>
// kernel: classifier_forward.1
= control target key start
LH: loop header
LB: loop body
LE: loop exit
PB: predicated region body
PF: predicated region fallthrough
CT: control target
= control target key end

     0   :  { %10 = vsyncpa [#allocation3], 0  ;;  %s609_s0 = inlined_call_operand.hbm [shape: f32[8,32], index: 0, kind: input, shape index: {}]   ;;  %s610_s1 = inlined_call_operand.hbm [shape: bf16[32,128], index: 1, kind: input, shape index: {}]   ;;  %s611_s2 = inlined_call_operand.hbm [shape: f32[1,128], index: 2, kind: input, shape index: {}]   ;;  %s612_s3 = inlined_call_operand.hbm [shape: bf16[128,128], index: 3, kind: input, shape index: {}]   ;;  %s613_s4 = inlined_call_operand.hbm [shape: f32[1,128], index: 4, kind: input, shape index: {}]   ;;  %s614_s5 = inlined_call_operand.hbm [shape: f32[8,128], index: 5, kind: output, shape index: {}]  }
   0x1   :  { %11 = vsyncpa [#allocation6], 0 }
   0x2   :  { %12 = vsyncpa [#allocation9], 0 }
   0x3   :  { %13 = vsyncpa [#allocation4], 0  ;;  %s497_s18 = smov [#allocation5]   ;;  %s357_s22 = scalar_lea.hbm %s610_s1, 256 }
   0x4   :  { %s29_s19 = sshll.u32 %s497_s18, 4  ;;  %p358_p0 = scmp.ne.s32.totalorder %s610_s1, %s357_s22  ;;  %s30_s19 = int_to_ptr.vmem [resolvable:$true] %s29_s19 }
   0x5   :  { %p361_p1 = scmp.lt.u32.totalorder %s357_s22, %s610_s1 }
   0x7   :  { %p363_p2 = pnand %p361_p1, %p358_p0 }
   0x9   :  { %366 = shalt.err (!%p363_p2)
}
   0xa   :  { %s367_s27 = scalar_lea.vmem %s30_s19, 256  ;;  %p372_p4 = scmp.lt.s32.totalorder %s30_s19, %s30_s19 }
   0xb   :  { %p368_p3 = scmp.ne.s32.totalorder %s30_s19, %s367_s27  ;;  %p373_p5 = scmp.lt.s32.totalorder %s367_s27, %s367_s27 }
   0xd   :  { %p374_p6 = por %p373_p5, %p372_p4 }
   0xf   :  { %p375_p7 = pnand %p374_p6, %p368_p3 }
  0x11   :  { %378 = shalt.err (!%p375_p7)
}
  0x12   :  { %s498_s28 = smov 64   ;;  %s499_s29 = smov 4  }
  0x13   :  { %35 = dma.hbm_to_vmem [thread:$0]  %s610_s1, 256, %s30_s19, [#allocation6], %s498_s28, %s498_s28, %s499_s29  }
  0x14   :  { %s500_s7 = smov [#allocation8]   ;;  %s501_s9 = smov [#allocation2]  }
  0x15   :  { %s51_s8 = sshll.u32 %s500_s7, 4  ;;  %s20_s10 = sshll.u32 %s501_s9, 4  ;;  %s52_s8 = int_to_ptr.vmem [resolvable:$true] %s51_s8  ;;  %s21_s10 = int_to_ptr.vmem [resolvable:$true] %s20_s10 }
  0x16   :  { %s379_s13 = scalar_lea.hbm %s612_s3, 1024 }
  0x17   :  { %p380_p8 = scmp.ne.s32.totalorder %s612_s3, %s379_s13  ;;  %p383_p9 = scmp.lt.u32.totalorder %s379_s13, %s612_s3 }
  0x19   :  { %p385_p10 = pnand %p383_p9, %p380_p8 }
  0x1b   :  { %388 = shalt.err (!%p385_p10)
}
  0x1c   :  { %s389_s1 = scalar_lea.vmem %s52_s8, 1024  ;;  %p394_p12 = scmp.lt.s32.totalorder %s52_s8, %s52_s8 }
  0x1d   :  { %p390_p11 = scmp.ne.s32.totalorder %s52_s8, %s389_s1  ;;  %p395_p13 = scmp.lt.s32.totalorder %s389_s1, %s389_s1 }
  0x1f   :  { %p396_p0 = por %p395_p13, %p394_p12 }
  0x21   :  { %p397_p1 = pnand %p396_p0, %p390_p11 }
  0x23   :  { %400 = shalt.err (!%p397_p1)
}
  0x24   :  { %57 = dma.hbm_to_vmem [thread:$0]  %s612_s3, 1024, %s52_s8, [#allocation9], %s498_s28, %s498_s28, %s499_s29  }
  0x25   :  { %s401_s22 = scalar_lea.hbm %s609_s0, 128 }
  0x26   :  { %p402_p2 = scmp.ne.s32.totalorder %s609_s0, %s401_s22  ;;  %p405_p3 = scmp.lt.u32.totalorder %s401_s22, %s609_s0 }
  0x28   :  { %p407_p4 = pnand %p405_p3, %p402_p2 }
  0x2a   :  { %410 = shalt.err (!%p407_p4)
}
  0x2b   :  { %s411_s27 = scalar_lea.vmem %s21_s10, 128  ;;  %p416_p6 = scmp.lt.s32.totalorder %s21_s10, %s21_s10 }
  0x2c   :  { %p412_p5 = scmp.ne.s32.totalorder %s21_s10, %s411_s27  ;;  %p417_p7 = scmp.lt.s32.totalorder %s411_s27, %s411_s27 }
  0x2e   :  { %p418_p8 = por %p417_p7, %p416_p6 }
  0x30   :  { %p419_p9 = pnand %p418_p8, %p412_p5 }
  0x32   :  { %422 = shalt.err (!%p419_p9)
}
  0x33   :  { %23 = dma.hbm_to_vmem [thread:$0]  %s609_s0, 128, %s21_s10, [#allocation3]  }
  0x34   :  { %s502_s29 = smov [#allocation7]   ;;  %s503_s6 = smov [#allocation10]  }
  0x35   :  { %s42_s30 = sshll.u32 %s502_s29, 4  ;;  %s64_s7 = sshll.u32 %s503_s6, 4  ;;  %s43_s30 = int_to_ptr.vmem [resolvable:$true] %s42_s30  ;;  %s65_s7 = int_to_ptr.vmem [resolvable:$true] %s64_s7 }
  0x36   :  { %s423_s11 = scalar_lea.hbm %s611_s2, 16 }
  0x37   :  { %p424_p10 = scmp.ne.s32.totalorder %s611_s2, %s423_s11  ;;  %p427_p11 = scmp.lt.u32.totalorder %s423_s11, %s611_s2 }
  0x39   :  { %p429_p12 = pnand %p427_p11, %p424_p10 }
  0x3b   :  { %432 = shalt.err (!%p429_p12)
}
  0x3c   :  { %s433_s0 = scalar_lea.vmem %s43_s30, 16  ;;  %s437_s10 = scalar_lea.vmem %s43_s30, 32 }
  0x3d   :  { %p434_p13 = scmp.ne.s32.totalorder %s43_s30, %s433_s0  ;;  %p438_p0 = scmp.lt.s32.totalorder %s43_s30, %s43_s30 }
  0x3e   :  { %p439_p1 = scmp.lt.s32.totalorder %s437_s10, %s433_s0 }
  0x40   :  { %p440_p2 = por %p439_p1, %p438_p0 }
  0x42   :  { %p441_p3 = pnand %p440_p2, %p434_p13 }
  0x44   :  { %444 = shalt.err (!%p441_p3)
}
  0x45   :  { %45 = dma.hbm_to_vmem [thread:$0]  %s611_s2, 16, %s43_s30, [#allocation6]  }
  0x46   :  { %s445_s19 = scalar_lea.hbm %s613_s4, 16 }
  0x47   :  { %p446_p4 = scmp.ne.s32.totalorder %s613_s4, %s445_s19  ;;  %p449_p5 = scmp.lt.u32.totalorder %s445_s19, %s613_s4 }
  0x49   :  { %p451_p6 = pnand %p449_p5, %p446_p4 }
  0x4b   :  { %454 = shalt.err (!%p451_p6)
}
  0x4c   :  { %s455_s24 = scalar_lea.vmem %s65_s7, 16  ;;  %s459_s25 = scalar_lea.vmem %s65_s7, 32 }
  0x4d   :  { %p456_p7 = scmp.ne.s32.totalorder %s65_s7, %s455_s24  ;;  %p460_p8 = scmp.lt.s32.totalorder %s65_s7, %s65_s7 }
  0x4e   :  { %p461_p9 = scmp.lt.s32.totalorder %s459_s25, %s455_s24 }
  0x50   :  { %p462_p10 = por %p461_p9, %p460_p8 }
  0x52   :  { %p463_p11 = pnand %p462_p10, %p456_p7 }
  0x54   :  { %466 = shalt.err (!%p463_p11)
}
  0x55   :  { %67 = dma.hbm_to_vmem [thread:$0]  %s613_s4, 16, %s65_s7, [#allocation9]  }
  0x56   :  { %489 = dma.done.wait [#allocation3], 128  }
  0x57   :  { %490 = vsyncadd [#allocation3], 4294967168 }
  0x58   :  { %491 = dma.done.wait [#allocation6], 272  }
  0x59   :  { %492 = vsyncadd [#allocation6], 4294967024 }
  0x5a   :  { %493 = dma.done.wait [#allocation9], 1040  }
  0x5b   :  { %494 = vsyncadd [#allocation9], 4294966256  ;;  %v504_v0 = vmov 0.0   ;;  %vm505_vm0 = vmmov 0   ;;  %v347_v1 = vld [vmem:[#allocation5] sm:$0xff]   ;;  %v348_v2 = vld [vmem:[#allocation5 + $0x8] sm:$0xff]  }
  0x5c   :  { %309 = vmatprep.subr.bf16.mxu0 %v504_v0  ;;  %313 = vmatprep.mubr.msk.bf16.mxu0 %vm505_vm0, %v504_v0  ;;  %v84_v3 = vld [vmem:[#allocation2] sm:$0xff]  ;;  %vm109_vm1 = vcmask 261120   ;;  %v351_v7 = vld [vmem:[#allocation8 + $0x10] sm:$0xff]   ;;  %v352_v8 = vld [vmem:[#allocation8 + $0x18] sm:$0xff]   ;;  %s506_s4 = smov [#allocation11]  }
  0x5d   :  { %317 = vmatprep.subr.bf16.mxu1 %v504_v0  ;;  %333 = vmatprep.mubr.msk.bf16.mxu1 %vm505_vm0, %v504_v0  ;;  %v349_v4 = vld [vmem:[#allocation8] sm:$0xff]   ;;  %v85_v5 = vpack.c.bf16 %v84_v3, %v84_v3  ;;  %v350_v6 = vld [vmem:[#allocation8 + $0x8] sm:$0xff]   ;;  %v355_v11 = vld [vmem:[#allocation8 + $0x30] sm:$0xff]   ;;  %s273_s27 = sshll.u32 %s506_s4, 4  ;;  %s274_s27 = int_to_ptr.vmem [resolvable:$true] %s273_s27 }
  0x5e   :  { %310 = vmatpush3.bf16.msra.mxu0 %v347_v1  ;;  %318 = vmatpush3.bf16.msra.mxu1 %v349_v4  ;;  %v353_v9 = vld [vmem:[#allocation8 + $0x20] sm:$0xff]   ;;  %v354_v10 = vld [vmem:[#allocation8 + $0x28] sm:$0xff]   ;;  %v356_v12 = vld [vmem:[#allocation8 + $0x38] sm:$0xff]   ;;  %s467_s3 = scalar_lea.vmem %s274_s27, 128  ;;  %p472_p13 = scmp.lt.s32.totalorder %s274_s27, %s274_s27 }
  0x5f   :  { %311 = vmatprep.subr.bf16.mxu0 %v504_v0  ;;  %319 = vmatprep.subr.bf16.mxu1 %v504_v0  ;;  %v284_v13 = vld [vmem:[#allocation7] ss:$0 sm:$0xff]  ;;  %v288_v21 = vld [vmem:[#allocation10] ss:$0 sm:$0xff]  ;;  %p468_p12 = scmp.ne.s32.totalorder %s274_s27, %s467_s3  ;;  %p473_p0 = scmp.lt.s32.totalorder %s467_s3, %s467_s3 }
  0x61   :  { %p474_p1 = por %p473_p0, %p472_p13 }
  0x62   :  { %312 = vmatpush3.bf16.msra.mxu0 %v348_v2  ;;  %320 = vmatpush3.bf16.msra.mxu1 %v350_v6 }
  0x63   :  { %321 = vmatprep.subr.bf16.mxu1 %v504_v0  ;;  %p475_p2 = pnand %p474_p1, %p468_p12 }
  0x65   :  { %314 = vmatmul.mubr.msk.bf16.vlgmr.msra.gmra.mrb[0].mxu0 %vm109_vm1, %v85_v5 }
  0x66   :  { %322 = vmatpush3.bf16.msra.mxu1 %v351_v7 }
  0x67   :  { %323 = vmatprep.subr.bf16.mxu1 %v504_v0 }
  0x6a   :  { %324 = vmatpush3.bf16.msra.mxu1 %v352_v8 }
  0x6b   :  { %325 = vmatprep.subr.bf16.mxu1 %v504_v0 }
  0x6e   :  { %326 = vmatpush3.bf16.msra.mxu1 %v353_v9 }
  0x6f   :  { %327 = vmatprep.subr.bf16.mxu1 %v504_v0 }
  0x72   :  { %328 = vmatpush3.bf16.msra.mxu1 %v354_v10 }
  0x73   :  { %329 = vmatprep.subr.bf16.mxu1 %v504_v0 }
  0x76   :  { %330 = vmatpush3.bf16.msra.mxu1 %v355_v11 }
  0x77   :  { %331 = vmatprep.subr.bf16.mxu1 %v504_v0 }
  0x7a   :  { %332 = vmatpush3.bf16.msra.mxu1 %v356_v12 }
 0x138   :  { %v147_v14 = vpop.f32.mrb[0].mxu0 }
 0x139   :  { %v148_v15 = vadd.f32 %v284_v13, %v147_v14  ;;  %v315_v16 = vpop.f32.mrb[1].mxu0 }
 0x13a   :  { %v150_v17 = vpop.f32.mrb[2].mxu0 }
 0x13b   :  { %v153_v18 = vmax.f32 %v148_v15, 0.0  ;;  %v316_v19 = vpop.f32.mrb[3].mxu0 }
 0x13d   :  { %v154_v20 = vpack.c.bf16 %v153_v18, %v153_v18 }
 0x13f   :  { %334 = vmatmul.mubr.bf16.vlgmr.msra.gmra.mrb[0].mxu1 %v154_v20 }
 0x212   :  { %v260_v22 = vpop.f32.mrb[0].mxu1 }
 0x213   :  { %v261_v23 = vadd.f32 %v288_v21, %v260_v22  ;;  %v335_v24 = vpop.f32.mrb[1].mxu1 }
 0x214   :  { %v263_v25 = vpop.f32.mrb[2].mxu1 }
 0x215   :  { %266 = vst [vmem:[#allocation11] sm:$0xff] %v261_v23  ;;  %v336_v26 = vpop.f32.mrb[3].mxu1 }
 0x216   :  { %478 = shalt.err (!%p475_p2)
}
 0x217   :  { %s479_s30 = scalar_lea.hbm %s614_s5, 128 }
 0x218   :  { %p480_p3 = scmp.ne.s32.totalorder %s614_s5, %s479_s30  ;;  %p483_p4 = scmp.lt.u32.totalorder %s479_s30, %s614_s5 }
 0x21a   :  { %p485_p5 = pnand %p483_p4, %p480_p3 }
 0x21c   :  { %488 = shalt.err (!%p485_p5)
}
 0x21d   :  { %276 = dma.vmem_to_hbm [thread:$0]  %s274_s27, 128, %s614_s5, [#allocation4]  }
 0x21e   :  { %495 = dma.done.wait [#allocation4], 128  }
 0x21f   :  { %496 = vsyncadd [#allocation4], 4294967168 }
 0x220   :  { %280 = vsyncpa [#allocation3], 1 }
 0x221   :  { %281 = vsyncpa [#allocation6], 1 }
 0x222   :  { %282 = vsyncpa [#allocation9], 1 }
 0x223   :  { %283 = vsyncpa [#allocation4], 1 }

</bundles_post_ra>
